<compile_context>
chip_gen: v7x
topology: tpu7x:2x2x1
jax: 0.10.0
libtpu: 0.0.40
codegen_flags: <defaults>
</compile_context>

<pallas_src>
import numpy as np

import jax
import jax.numpy as jnp
from jax.experimental import pallas as pl
from jax.experimental.pallas import tpu as pltpu


# ----------------------------------------------------------------------------
# Pallas kernel: fused "bilinear resize + crop" for a slab of P planes.
# ----------------------------------------------------------------------------
def _dcrop_kernel(l3_ref, r3t_ref, x_ref, o_ref):
    # l3_ref : (crop, H)        row resample+crop matrix (shared by all planes)
    # r3t_ref: (W, crop)        column resample+crop matrix, pre-transposed
    # x_ref  : (P, H, W)        P image planes (leading axis = plane)
    # o_ref  : (P, crop, crop)  per-plane result, compute dtype
    l3 = l3_ref[...]
    r3t = r3t_ref[...]
    p_planes = x_ref.shape[0]
    # Static unroll over planes; P is bounded by the grid planner, and each
    # iteration is two small 2-D MXU dots against the shared matrices (no
    # block-diagonal RHS, no in-kernel transposes).
    for p in range(p_planes):
        t = jnp.dot(l3, x_ref[p], preferred_element_type=jnp.float32)
        o_ref[p] = jnp.dot(t.astype(r3t.dtype), r3t,
                           preferred_element_type=jnp.float32).astype(o_ref.dtype)


# ----------------------------------------------------------------------------
# Host-side helpers (static numpy constants / grid planning).
# ----------------------------------------------------------------------------
def _resize_matrix(in_size: int, out_size: int, antialias: bool = True) -> np.ndarray:
    """(out_size, in_size) matrix M s.t. y = M @ x reproduces torch bilinear
    resize along one dim (align_corners=False). antialias=True matches the
    modern torchvision default for tensor inputs when downsampling."""
    scale = in_size / out_size
    m = np.zeros((out_size, in_size), dtype=np.float32)
    if antialias and scale > 1.0:
        support = scale            # bilinear filter support (=1) * scale
        invscale = 1.0 / scale
        for i in range(out_size):
            center = scale * (i + 0.5)
            xmin = max(int(center - support + 0.5), 0)
            xmax = min(int(center + support + 0.5), in_size)
            idx = np.arange(xmin, xmax)
            w = np.maximum(0.0, 1.0 - np.abs((idx + 0.5 - center) * invscale))
            s = w.sum()
            if s > 0:
                m[i, xmin:xmax] = w / s
    else:
        for i in range(out_size):
            src = max((i + 0.5) * scale - 0.5, 0.0)
            i0 = min(int(np.floor(src)), in_size - 1)
            i1 = min(i0 + 1, in_size - 1)
            w1 = src - i0
            m[i, i0] += 1.0 - w1
            m[i, i1] += w1
    return m


def _plan_grid(n_planes: int, h: int, w: int, crop: int,
               in_isize: int, out_isize: int):
    """Pick the number of grid chunks.

    v5e/v6e have one TensorCore -> every extra grid step is ~0.35us of pure
    pipeline overhead, so prefer 1 chunk.  v7x has two TCs -> start at 2
    "parallel" chunks.  Split further only if the per-step (double-buffered)
    tiles would not fit a conservative VMEM budget (v7x has only 64 MiB).
    Returns (num_chunks, est_bytes_per_step, physical_vmem_bytes)."""
    phys = 64 << 20                      # conservative fallback (v7x size)
    try:
        phys = int(getattr(pltpu.get_tpu_info(), "vmem_capacity_bytes", phys))
    except Exception:
        pass
    kind = ""
    try:
        kind = jax.devices()[0].device_kind.lower()
    except Exception:
        pass
    n_tc = 2 if "v7" in kind else 1

    budget = int(0.55 * phys)            # leave headroom for compiler scratch
    max_unroll = 64                      # bound static unroll / compile time

    def step_bytes(p):
        return (2 * p * h * w * in_isize             # double-buffered input tile
                + 2 * p * crop * crop * out_isize    # double-buffered output tile
                + 2 * (crop * h + w * crop) * in_isize
                + (1 << 20))                         # slack

    for c in range(n_tc, n_planes + 1):
        if n_planes % c:
            continue
        p = n_planes // c
        if p <= max_unroll and step_bytes(p) <= budget:
            return c, step_bytes(p), phys
    return n_planes, step_bytes(1), phys


# ----------------------------------------------------------------------------
# ROIsProposal forward (stn=None).
# ----------------------------------------------------------------------------
def rois_proposal(x, key, crop_size: int, downsample_size: int,
                  antialias: bool = True, compute_in_bf16: bool = None):
    B, C, H, W = x.shape
    N = B * C
    ds = downsample_size
    crop = crop_size
    assert crop <= H and crop <= W and crop <= ds, \
        "pad_if_needed padding path not implemented (never triggers here)"

    if compute_in_bf16 is None:
        compute_in_bf16 = (x.dtype == jnp.bfloat16)
    compute_dtype = jnp.bfloat16 if compute_in_bf16 else jnp.float32

    # Per-call random crop offsets (JAX PRNG; torch RNG stream parity is
    # impossible, semantics are the same).
    k1, k2, k3, k4, k5, k6 = jax.random.split(key, 6)
    t1 = jax.random.randint(k1, (), 0, H - crop + 1)
    l1 = jax.random.randint(k2, (), 0, W - crop + 1)
    t2 = jax.random.randint(k3, (), 0, H - crop + 1)
    l2 = jax.random.randint(k4, (), 0, W - crop + 1)
    t3 = jax.random.randint(k5, (), 0, ds - crop + 1)
    l3 = jax.random.randint(k6, (), 0, ds - crop + 1)

    # roi1 / roi2 are exact crops: dynamic slices, not matmuls.
    zero = jnp.int32(0)
    roi1 = jax.lax.dynamic_slice(x, (zero, zero, t1, l1), (B, C, crop, crop))
    roi2 = jax.lax.dynamic_slice(x, (zero, zero, t2, l2), (B, C, crop, crop))

    # Static 1-D resize matrices; crop-after-resize == row-sliced matrix.
    Mh = jnp.asarray(_resize_matrix(H, ds, antialias))                 # (ds, H)
    Mw = jnp.asarray(_resize_matrix(W, ds, antialias))                 # (ds, W)
    L3 = jax.lax.dynamic_slice(Mh, (t3, zero), (crop, H)).astype(compute_dtype)
    R3T = (jax.lax.dynamic_slice(Mw, (l3, zero), (crop, W)).T          # (W, crop)
           .astype(compute_dtype))

    # Planes on the leading axis: free reshape, no HBM transpose.
    x3 = x.reshape(N, H, W).astype(compute_dtype)

    in_isize = jnp.dtype(compute_dtype).itemsize
    out_isize = in_isize
    num_chunks, est_vmem, phys_vmem = _plan_grid(N, H, W, crop, in_isize, out_isize)
    P = N // num_chunks

    cost = pl.CostEstimate(
        flops=2 * N * crop * W * (H + crop),
        transcendentals=0,
        bytes_accessed=(N * H * W * in_isize
                        + N * crop * crop * out_isize
                        + (crop * H + W * crop) * in_isize))

    cp_kwargs = dict(dimension_semantics=("parallel",))
    if est_vmem > (12 << 20):
        cp_kwargs["vmem_limit_bytes"] = int(min(max(2 * est_vmem, 32 << 20),
                                                0.75 * phys_vmem))

    out_flat = pl.pallas_call(
        _dcrop_kernel,
        grid=(num_chunks,),
        in_specs=[
            pl.BlockSpec((crop, H), lambda i: (0, 0)),       # L3 (resident)
            pl.BlockSpec((W, crop), lambda i: (0, 0)),       # R3T (resident)
            pl.BlockSpec((P, H, W), lambda i: (i, 0, 0)),    # plane slab
        ],
        out_specs=pl.BlockSpec((P, crop, crop), lambda i: (i, 0, 0)),
        out_shape=jax.ShapeDtypeStruct((N, crop, crop), compute_dtype),
        compiler_params=pltpu.CompilerParams(**cp_kwargs),
        cost_estimate=cost,
    )(L3, R3T, x3)

    dcrop = out_flat.reshape(B, C, crop, crop)
    if jnp.issubdtype(x.dtype, jnp.integer):
        info = jnp.iinfo(x.dtype)
        dcrop = jnp.clip(jnp.round(dcrop), info.min, info.max)
    dcrop = dcrop.astype(x.dtype)

    return roi1, roi2, dcrop


# ----------------------------------------------------------------------------
# Demo / self-check.
# ----------------------------------------------------------------------------
if __name__ == "__main__":
    crop_size, downsample_size = 8, 12
    key = jax.random.PRNGKey(0)
    kx, kc = jax.random.split(key)
    x = jax.random.normal(kx, (2, 4, 16, 16), dtype=jnp.float32)

    fn = jax.jit(lambda xx, kk: rois_proposal(xx, kk, crop_size, downsample_size))
    roi1, roi2, dcrop = fn(x, kc)
    jax.block_until_ready((roi1, roi2, dcrop))

    assert roi1.shape == (2, 4, crop_size, crop_size)
    assert roi2.shape == (2, 4, crop_size, crop_size)
    assert dcrop.shape == (2, 4, crop_size, crop_size)

    # Recompute the (deterministic) offsets and a pure-jnp reference.
    H = W = 16
    k1, k2, k3, k4, k5, k6 = jax.random.split(kc, 6)
    t1 = int(jax.random.randint(k1, (), 0, H - crop_size + 1))
    l1 = int(jax.random.randint(k2, (), 0, W - crop_size + 1))
    t2 = int(jax.random.randint(k3, (), 0, H - crop_size + 1))
    l2 = int(jax.random.randint(k4, (), 0, W - crop_size + 1))
    t3 = int(jax.random.randint(k5, (), 0, downsample_size - crop_size + 1))
    l3 = int(jax.random.randint(k6, (), 0, downsample_size - crop_size + 1))

    assert jnp.allclose(roi1, x[:, :, t1:t1 + crop_size, l1:l1 + crop_size])
    assert jnp.allclose(roi2, x[:, :, t2:t2 + crop_size, l2:l2 + crop_size])

    Mh = jnp.asarray(_resize_matrix(H, downsample_size, True))
    Mw = jnp.asarray(_resize_matrix(W, downsample_size, True))
    down = jnp.einsum('dh,bchw,ew->bcde', Mh, x, Mw)
    ref_d = down[:, :, t3:t3 + crop_size, l3:l3 + crop_size]
    assert jnp.allclose(dcrop, ref_d, atol=1e-4)

    print("KERNEL_OK")
</pallas_src>

<mosaic_0001>
module attributes {stable_mosaic.version = 11 : i64} {
  func.func @_dcrop_kernel(%arg0: i32, %arg1: memref<8x16xf32, #tpu.memory_space<vmem>>, %arg2: memref<16x8xf32, #tpu.memory_space<vmem>>, %arg3: memref<8x16x16xf32, #tpu.memory_space<vmem>>, %arg4: memref<8x8x8xf32, #tpu.memory_space<vmem>>) attributes {dimension_semantics = [#tpu.dimension_semantics<parallel>], iteration_bounds = array<i64: 1>, scalar_prefetch = 0 : i64, scratch_operands = 0 : i64, tpu.core_type = #tpu.core_type<tc>, window_params = [{pipeline_mode = #tpu.pipeline_mode<synchronous>, transform_indices = @transform_0, window_bounds = array<i64: 8, 16>}, {pipeline_mode = #tpu.pipeline_mode<synchronous>, transform_indices = @transform_1, window_bounds = array<i64: 16, 8>}, {transform_indices = @transform_2, window_bounds = array<i64: 8, 16, 16>}, {transform_indices = @transform_3, window_bounds = array<i64: 8, 8, 8>}]} {
    %c0 = arith.constant 0 : index
    %c0_0 = arith.constant 0 : index
    %0 = vector.load %arg1[%c0, %c0_0] : memref<8x16xf32, #tpu.memory_space<vmem>>, vector<8x16xf32>
    %c0_1 = arith.constant 0 : index
    %c0_2 = arith.constant 0 : index
    %1 = vector.load %arg2[%c0_1, %c0_2] : memref<16x8xf32, #tpu.memory_space<vmem>>, vector<16x8xf32>
    %c0_3 = arith.constant 0 : index
    %c0_4 = arith.constant 0 : index
    %c0_5 = arith.constant 0 : index
    %2 = vector.load %arg3[%c0_3, %c0_4, %c0_5] : memref<8x16x16xf32, #tpu.memory_space<vmem>>, vector<1x16x16xf32>
    %3 = vector.shape_cast %2 : vector<1x16x16xf32> to vector<16x16xf32>
    %cst = arith.constant dense<0.000000e+00> : vector<8x16xf32>
    %4 = tpu.matmul %0, %3, %cst {dimension_numbers = #tpu.dot_dimension_numbers<[1], [0], [0], [1], [0, 0, 1, 1], [], []>} : vector<8x16xf32>, vector<16x16xf32>, vector<8x16xf32> -> vector<8x16xf32>
    %cst_6 = arith.constant dense<0.000000e+00> : vector<8x8xf32>
    %5 = tpu.matmul %4, %1, %cst_6 {dimension_numbers = #tpu.dot_dimension_numbers<[1], [0], [0], [1], [0, 0, 1, 1], [], []>} : vector<8x16xf32>, vector<16x8xf32>, vector<8x8xf32> -> vector<8x8xf32>
    %c0_7 = arith.constant 0 : index
    %c0_8 = arith.constant 0 : index
    %c0_9 = arith.constant 0 : index
    %6 = vector.load %arg4[%c0_7, %c0_8, %c0_9] : memref<8x8x8xf32, #tpu.memory_space<vmem>>, vector<1x8x8xf32>
    %7 = vector.shape_cast %6 : vector<1x8x8xf32> to vector<8x8xf32>
    %8 = vector.shape_cast %5 : vector<8x8xf32> to vector<1x8x8xf32>
    tpu.vector_store %arg4[%c0_7, %c0_8, %c0_9], %8 {strides = array<i32>} : memref<8x8x8xf32, #tpu.memory_space<vmem>>, vector<1x8x8xf32>,
    %c1 = arith.constant 1 : index
    %c0_10 = arith.constant 0 : index
    %c0_11 = arith.constant 0 : index
    %9 = vector.load %arg3[%c1, %c0_10, %c0_11] : memref<8x16x16xf32, #tpu.memory_space<vmem>>, vector<1x16x16xf32>
    %10 = vector.shape_cast %9 : vector<1x16x16xf32> to vector<16x16xf32>
    %cst_12 = arith.constant dense<0.000000e+00> : vector<8x16xf32>
    %11 = tpu.matmul %0, %10, %cst_12 {dimension_numbers = #tpu.dot_dimension_numbers<[1], [0], [0], [1], [0, 0, 1, 1], [], []>} : vector<8x16xf32>, vector<16x16xf32>, vector<8x16xf32> -> vector<8x16xf32>
    %cst_13 = arith.constant dense<0.000000e+00> : vector<8x8xf32>
    %12 = tpu.matmul %11, %1, %cst_13 {dimension_numbers = #tpu.dot_dimension_numbers<[1], [0], [0], [1], [0, 0, 1, 1], [], []>} : vector<8x16xf32>, vector<16x8xf32>, vector<8x8xf32> -> vector<8x8xf32>
    %c1_14 = arith.constant 1 : index
    %c0_15 = arith.constant 0 : index
    %c0_16 = arith.constant 0 : index
    %13 = vector.load %arg4[%c1_14, %c0_15, %c0_16] : memref<8x8x8xf32, #tpu.memory_space<vmem>>, vector<1x8x8xf32>
    %14 = vector.shape_cast %13 : vector<1x8x8xf32> to vector<8x8xf32>
    %15 = vector.shape_cast %12 : vector<8x8xf32> to vector<1x8x8xf32>
    tpu.vector_store %arg4[%c1_14, %c0_15, %c0_16], %15 {strides = array<i32>} : memref<8x8x8xf32, #tpu.memory_space<vmem>>, vector<1x8x8xf32>,
    %c2 = arith.constant 2 : index
    %c0_17 = arith.constant 0 : index
    %c0_18 = arith.constant 0 : index
    %16 = vector.load %arg3[%c2, %c0_17, %c0_18] : memref<8x16x16xf32, #tpu.memory_space<vmem>>, vector<1x16x16xf32>
    %17 = vector.shape_cast %16 : vector<1x16x16xf32> to vector<16x16xf32>
    %cst_19 = arith.constant dense<0.000000e+00> : vector<8x16xf32>
    %18 = tpu.matmul %0, %17, %cst_19 {dimension_numbers = #tpu.dot_dimension_numbers<[1], [0], [0], [1], [0, 0, 1, 1], [], []>} : vector<8x16xf32>, vector<16x16xf32>, vector<8x16xf32> -> vector<8x16xf32>
    %cst_20 = arith.constant dense<0.000000e+00> : vector<8x8xf32>
    %19 = tpu.matmul %18, %1, %cst_20 {dimension_numbers = #tpu.dot_dimension_numbers<[1], [0], [0], [1], [0, 0, 1, 1], [], []>} : vector<8x16xf32>, vector<16x8xf32>, vector<8x8xf32> -> vector<8x8xf32>
    %c2_21 = arith.constant 2 : index
    %c0_22 = arith.constant 0 : index
    %c0_23 = arith.constant 0 : index
    %20 = vector.load %arg4[%c2_21, %c0_22, %c0_23] : memref<8x8x8xf32, #tpu.memory_space<vmem>>, vector<1x8x8xf32>
    %21 = vector.shape_cast %20 : vector<1x8x8xf32> to vector<8x8xf32>
    %22 = vector.shape_cast %19 : vector<8x8xf32> to vector<1x8x8xf32>
    tpu.vector_store %arg4[%c2_21, %c0_22, %c0_23], %22 {strides = array<i32>} : memref<8x8x8xf32, #tpu.memory_space<vmem>>, vector<1x8x8xf32>,
    %c3 = arith.constant 3 : index
    %c0_24 = arith.constant 0 : index
    %c0_25 = arith.constant 0 : index
    %23 = vector.load %arg3[%c3, %c0_24, %c0_25] : memref<8x16x16xf32, #tpu.memory_space<vmem>>, vector<1x16x16xf32>
    %24 = vector.shape_cast %23 : vector<1x16x16xf32> to vector<16x16xf32>
    %cst_26 = arith.constant dense<0.000000e+00> : vector<8x16xf32>
    %25 = tpu.matmul %0, %24, %cst_26 {dimension_numbers = #tpu.dot_dimension_numbers<[1], [0], [0], [1], [0, 0, 1, 1], [], []>} : vector<8x16xf32>, vector<16x16xf32>, vector<8x16xf32> -> vector<8x16xf32>
    %cst_27 = arith.constant dense<0.000000e+00> : vector<8x8xf32>
    %26 = tpu.matmul %25, %1, %cst_27 {dimension_numbers = #tpu.dot_dimension_numbers<[1], [0], [0], [1], [0, 0, 1, 1], [], []>} : vector<8x16xf32>, vector<16x8xf32>, vector<8x8xf32> -> vector<8x8xf32>
    %c3_28 = arith.constant 3 : index
    %c0_29 = arith.constant 0 : index
    %c0_30 = arith.constant 0 : index
    %27 = vector.load %arg4[%c3_28, %c0_29, %c0_30] : memref<8x8x8xf32, #tpu.memory_space<vmem>>, vector<1x8x8xf32>
    %28 = vector.shape_cast %27 : vector<1x8x8xf32> to vector<8x8xf32>
    %29 = vector.shape_cast %26 : vector<8x8xf32> to vector<1x8x8xf32>
    tpu.vector_store %arg4[%c3_28, %c0_29, %c0_30], %29 {strides = array<i32>} : memref<8x8x8xf32, #tpu.memory_space<vmem>>, vector<1x8x8xf32>,
    %c4 = arith.constant 4 : index
    %c0_31 = arith.constant 0 : index
    %c0_32 = arith.constant 0 : index
    %30 = vector.load %arg3[%c4, %c0_31, %c0_32] : memref<8x16x16xf32, #tpu.memory_space<vmem>>, vector<1x16x16xf32>
    %31 = vector.shape_cast %30 : vector<1x16x16xf32> to vector<16x16xf32>
    %cst_33 = arith.constant dense<0.000000e+00> : vector<8x16xf32>
    %32 = tpu.matmul %0, %31, %cst_33 {dimension_numbers = #tpu.dot_dimension_numbers<[1], [0], [0], [1], [0, 0, 1, 1], [], []>} : vector<8x16xf32>, vector<16x16xf32>, vector<8x16xf32> -> vector<8x16xf32>
    %cst_34 = arith.constant dense<0.000000e+00> : vector<8x8xf32>
    %33 = tpu.matmul %32, %1, %cst_34 {dimension_numbers = #tpu.dot_dimension_numbers<[1], [0], [0], [1], [0, 0, 1, 1], [], []>} : vector<8x16xf32>, vector<16x8xf32>, vector<8x8xf32> -> vector<8x8xf32>
    %c4_35 = arith.constant 4 : index
    %c0_36 = arith.constant 0 : index
    %c0_37 = arith.constant 0 : index
    %34 = vector.load %arg4[%c4_35, %c0_36, %c0_37] : memref<8x8x8xf32, #tpu.memory_space<vmem>>, vector<1x8x8xf32>
    %35 = vector.shape_cast %34 : vector<1x8x8xf32> to vector<8x8xf32>
    %36 = vector.shape_cast %33 : vector<8x8xf32> to vector<1x8x8xf32>
    tpu.vector_store %arg4[%c4_35, %c0_36, %c0_37], %36 {strides = array<i32>} : memref<8x8x8xf32, #tpu.memory_space<vmem>>, vector<1x8x8xf32>,
    %c5 = arith.constant 5 : index
    %c0_38 = arith.constant 0 : index
    %c0_39 = arith.constant 0 : index
    %37 = vector.load %arg3[%c5, %c0_38, %c0_39] : memref<8x16x16xf32, #tpu.memory_space<vmem>>, vector<1x16x16xf32>
    %38 = vector.shape_cast %37 : vector<1x16x16xf32> to vector<16x16xf32>
    %cst_40 = arith.constant dense<0.000000e+00> : vector<8x16xf32>
    %39 = tpu.matmul %0, %38, %cst_40 {dimension_numbers = #tpu.dot_dimension_numbers<[1], [0], [0], [1], [0, 0, 1, 1], [], []>} : vector<8x16xf32>, vector<16x16xf32>, vector<8x16xf32> -> vector<8x16xf32>
    %cst_41 = arith.constant dense<0.000000e+00> : vector<8x8xf32>
    %40 = tpu.matmul %39, %1, %cst_41 {dimension_numbers = #tpu.dot_dimension_numbers<[1], [0], [0], [1], [0, 0, 1, 1], [], []>} : vector<8x16xf32>, vector<16x8xf32>, vector<8x8xf32> -> vector<8x8xf32>
    %c5_42 = arith.constant 5 : index
    %c0_43 = arith.constant 0 : index
    %c0_44 = arith.constant 0 : index
    %41 = vector.load %arg4[%c5_42, %c0_43, %c0_44] : memref<8x8x8xf32, #tpu.memory_space<vmem>>, vector<1x8x8xf32>
    %42 = vector.shape_cast %41 : vector<1x8x8xf32> to vector<8x8xf32>
    %43 = vector.shape_cast %40 : vector<8x8xf32> to vector<1x8x8xf32>
    tpu.vector_store %arg4[%c5_42, %c0_43, %c0_44], %43 {strides = array<i32>} : memref<8x8x8xf32, #tpu.memory_space<vmem>>, vector<1x8x8xf32>,
    %c6 = arith.constant 6 : index
    %c0_45 = arith.constant 0 : index
    %c0_46 = arith.constant 0 : index
    %44 = vector.load %arg3[%c6, %c0_45, %c0_46] : memref<8x16x16xf32, #tpu.memory_space<vmem>>, vector<1x16x16xf32>
    %45 = vector.shape_cast %44 : vector<1x16x16xf32> to vector<16x16xf32>
    %cst_47 = arith.constant dense<0.000000e+00> : vector<8x16xf32>
    %46 = tpu.matmul %0, %45, %cst_47 {dimension_numbers = #tpu.dot_dimension_numbers<[1], [0], [0], [1], [0, 0, 1, 1], [], []>} : vector<8x16xf32>, vector<16x16xf32>, vector<8x16xf32> -> vector<8x16xf32>
    %cst_48 = arith.constant dense<0.000000e+00> : vector<8x8xf32>
    %47 = tpu.matmul %46, %1, %cst_48 {dimension_numbers = #tpu.dot_dimension_numbers<[1], [0], [0], [1], [0, 0, 1, 1], [], []>} : vector<8x16xf32>, vector<16x8xf32>, vector<8x8xf32> -> vector<8x8xf32>
    %c6_49 = arith.constant 6 : index
    %c0_50 = arith.constant 0 : index
    %c0_51 = arith.constant 0 : index
    %48 = vector.load %arg4[%c6_49, %c0_50, %c0_51] : memref<8x8x8xf32, #tpu.memory_space<vmem>>, vector<1x8x8xf32>
    %49 = vector.shape_cast %48 : vector<1x8x8xf32> to vector<8x8xf32>
    %50 = vector.shape_cast %47 : vector<8x8xf32> to vector<1x8x8xf32>
    tpu.vector_store %arg4[%c6_49, %c0_50, %c0_51], %50 {strides = array<i32>} : memref<8x8x8xf32, #tpu.memory_space<vmem>>, vector<1x8x8xf32>,
    %c7 = arith.constant 7 : index
    %c0_52 = arith.constant 0 : index
    %c0_53 = arith.constant 0 : index
    %51 = vector.load %arg3[%c7, %c0_52, %c0_53] : memref<8x16x16xf32, #tpu.memory_space<vmem>>, vector<1x16x16xf32>
    %52 = vector.shape_cast %51 : vector<1x16x16xf32> to vector<16x16xf32>
    %cst_54 = arith.constant dense<0.000000e+00> : vector<8x16xf32>
    %53 = tpu.matmul %0, %52, %cst_54 {dimension_numbers = #tpu.dot_dimension_numbers<[1], [0], [0], [1], [0, 0, 1, 1], [], []>} : vector<8x16xf32>, vector<16x16xf32>, vector<8x16xf32> -> vector<8x16xf32>
    %cst_55 = arith.constant dense<0.000000e+00> : vector<8x8xf32>
    %54 = tpu.matmul %53, %1, %cst_55 {dimension_numbers = #tpu.dot_dimension_numbers<[1], [0], [0], [1], [0, 0, 1, 1], [], []>} : vector<8x16xf32>, vector<16x8xf32>, vector<8x8xf32> -> vector<8x8xf32>
    %c7_56 = arith.constant 7 : index
    %c0_57 = arith.constant 0 : index
    %c0_58 = arith.constant 0 : index
    %55 = vector.load %arg4[%c7_56, %c0_57, %c0_58] : memref<8x8x8xf32, #tpu.memory_space<vmem>>, vector<1x8x8xf32>
    %56 = vector.shape_cast %55 : vector<1x8x8xf32> to vector<8x8xf32>
    %57 = vector.shape_cast %54 : vector<8x8xf32> to vector<1x8x8xf32>
    tpu.vector_store %arg4[%c7_56, %c0_57, %c0_58], %57 {strides = array<i32>} : memref<8x8x8xf32, #tpu.memory_space<vmem>>, vector<1x8x8xf32>,
    return
  }
  func.func @transform_0(%arg0: i32) -> (i32, i32) {
    %c0_i32 = arith.constant 0 : i32
    %c0_i32_0 = arith.constant 0 : i32
    %c0_i32_1 = arith.constant 0 : i32
    return %c0_i32, %c0_i32_0 : i32, i32
  }
  func.func @transform_1(%arg0: i32) -> (i32, i32) {
    %c0_i32 = arith.constant 0 : i32
    %c0_i32_0 = arith.constant 0 : i32
    %c0_i32_1 = arith.constant 0 : i32
    return %c0_i32, %c0_i32_0 : i32, i32
  }
  func.func @transform_2(%arg0: i32) -> (i32, i32, i32) {
    %c0_i32 = arith.constant 0 : i32
    %c0_i32_0 = arith.constant 0 : i32
    %c0_i32_1 = arith.constant 0 : i32
    return %arg0, %c0_i32, %c0_i32_0 : i32, i32, i32
  }
  func.func @transform_3(%arg0: i32) -> (i32, i32, i32) {
    %c0_i32 = arith.constant 0 : i32
    %c0_i32_0 = arith.constant 0 : i32
    %c0_i32_1 = arith.constant 0 : i32
    return %arg0, %c0_i32, %c0_i32_0 : i32, i32, i32
  }
}

</mosaic_0001>

<bundles_post_ra>
// kernel: _lambda_.1
= control target key start
LH: loop header
LB: loop body
LE: loop exit
PB: predicated region body
PF: predicated region fallthrough
CT: control target
= control target key end

     0   :  { %v1489_v2 = vmov 0.0|0.0   ;;  %vm1490_vm0 = vmmov 0   ;;  %v1491_v4 = vmov 0.0   ;;  %vm20_vm1 = vcmask 130048   ;;  %s1666_s0 = inlined_call_operand.vmem [shape: f32[8,16], index: 0, kind: input, shape index: {}]   ;;  %s1667_s1 = inlined_call_operand.vmem [shape: f32[16,8], index: 1, kind: input, shape index: {}]   ;;  %s1668_s2 = inlined_call_operand.vmem [shape: f32[8,16,16], index: 2, kind: input, shape index: {}]   ;;  %s1669_s3 = inlined_call_operand.hbm [shape: f32[8,8,8], index: 3, kind: output, shape index: {}]  }
   0x1   :  { %v18_v0 = vld [vmem:[%s1668_s2] sm:$0xff]  ;;  %v19_v1 = vld [vmem:[%s1668_s2 + $0x8] sm:$0xff]  ;;  %1411 = vmatprep.subr.bf16.mxu0 %v1489_v2  ;;  %1303 = vmatprep.mubr.msk.f32.mxu0 %vm1490_vm0, %v1491_v4  ;;  %v1223_v5 = vld [vmem:[%s1668_s2 + $0x10] sm:$0xff] }
   0x2   :  { %v1412_v3 = vpack.c.bf16 %v19_v1, %v18_v0  ;;  %v1224_v6 = vld [vmem:[%s1668_s2 + $0x18] sm:$0xff]  ;;  %1414 = vmatprep.subr.bf16.mxu1 %v1489_v2  ;;  %1310 = vmatprep.mubr.msk.f32.mxu1 %vm1490_vm0, %v1491_v4  ;;  %v15_v7 = vld [vmem:[%s1666_s0] sm:$0xff]  ;;  %v1228_v10 = vld [vmem:[%s1668_s2 + $0x28] sm:$0xff] }
   0x3   :  { %v1418_v8 = vpack.c.bf16 %v1224_v6, %v1223_v5  ;;  %v1227_v9 = vld [vmem:[%s1668_s2 + $0x20] sm:$0xff]  ;;  %v17_v12 = vld [vmem:[%s1667_s1 + $0x8] sm:$0xff] }
   0x4   :  { %1413 = vmatpush3.bf16.msra.mxu0 %v1412_v3  ;;  %v16_v11 = vld [vmem:[%s1667_s1] sm:$0xff] }
   0x5   :  { %1417 = vmatprep.subr.bf16.mxu0 %v1489_v2 }
   0x7   :  { %1304 = vmatmul.mubr.msk.f32.vlgmr.msra.gmra.mrb[0].mxu0 %vm20_vm1, %v15_v7 }
   0x8   :  { %8 = vsyncpa [#allocation3], 0  ;;  %1419 = vmatpush3.bf16.msra.mxu0 %v1418_v8  ;;  %1317 = vmatprep.mubr.msk.f32.mxu0 %vm1490_vm0, %v1491_v4  ;;  %v1424_v13 = vpack.c.bf16 %v1228_v10, %v1227_v9  ;;  %v1552_v14 = vpack.c.bf16 %v17_v12, %v16_v11  ;;  %v1231_v15 = vld [vmem:[%s1668_s2 + $0x30] sm:$0xff]  ;;  %v1232_v16 = vld [vmem:[%s1668_s2 + $0x38] sm:$0xff]  ;;  %vm167_vm2 = vcmask 64512  }
   0x9   :  { %1423 = vmatprep.subr.bf16.mxu0 %v1489_v2  ;;  %v1430_v17 = vpack.c.bf16 %v1232_v16, %v1231_v15  ;;  %v1235_v18 = vld [vmem:[%s1668_s2 + $0x40] sm:$0xff]  ;;  %v1236_v19 = vld [vmem:[%s1668_s2 + $0x48] sm:$0xff]  ;;  %v1239_v21 = vld [vmem:[%s1668_s2 + $0x50] sm:$0xff] }
   0xa   :  { %1416 = vmatpush3.bf16.msra.mxu1 %v1552_v14  ;;  %v1436_v20 = vpack.c.bf16 %v1236_v19, %v1235_v18  ;;  %v1240_v22 = vld [vmem:[%s1668_s2 + $0x58] sm:$0xff]  ;;  %v1243_v24 = vld [vmem:[%s1668_s2 + $0x60] sm:$0xff]  ;;  %v1244_v25 = vld [vmem:[%s1668_s2 + $0x68] sm:$0xff] }
   0xb   :  { %1318 = vmatmul.mubr.msk.f32.vlgmr.msra.gmra.mrb[2].mxu0 %vm20_vm1, %v15_v7  ;;  %1420 = vmatprep.subr.bf16.mxu1 %v1489_v2  ;;  %v1442_v23 = vpack.c.bf16 %v1240_v22, %v1239_v21  ;;  %v1448_v26 = vpack.c.bf16 %v1244_v25, %v1243_v24  ;;  %v1247_v27 = vld [vmem:[%s1668_s2 + $0x70] sm:$0xff]  ;;  %v1248_v28 = vld [vmem:[%s1668_s2 + $0x78] sm:$0xff]  ;;  %s1492_s2 = smov [#allocation2]  }
   0xc   :  { %1425 = vmatpush3.bf16.msra.mxu0 %v1424_v13  ;;  %1331 = vmatprep.mubr.msk.f32.mxu0 %vm1490_vm0, %v1491_v4  ;;  %v1454_v29 = vpack.c.bf16 %v1248_v28, %v1247_v27  ;;  %s1210_s21 = sshll.u32 %s1492_s2, 4  ;;  %s1211_s21 = int_to_ptr.vmem [resolvable:$true] %s1210_s21 }
   0xd   :  { %1429 = vmatprep.subr.bf16.mxu0 %v1489_v2  ;;  %s1465_s22 = scalar_lea.vmem %s1211_s21, 1024  ;;  %p1470_p1 = scmp.lt.s32.totalorder %s1211_s21, %s1211_s21 }
   0xe   :  { %p1466_p0 = scmp.ne.s32.totalorder %s1211_s21, %s1465_s22  ;;  %p1471_p2 = scmp.lt.s32.totalorder %s1465_s22, %s1465_s22 }
   0xf   :  { %1332 = vmatmul.mubr.msk.f32.vlgmr.msra.gmra.mrb[4].mxu0 %vm20_vm1, %v15_v7 }
  0x10   :  { %1431 = vmatpush3.bf16.msra.mxu0 %v1430_v17  ;;  %1345 = vmatprep.mubr.msk.f32.mxu0 %vm1490_vm0, %v1491_v4  ;;  %p1472_p3 = por %p1471_p2, %p1470_p1 }
  0x11   :  { %1435 = vmatprep.subr.bf16.mxu0 %v1489_v2 }
  0x12   :  { %p1473_p4 = pnand %p1472_p3, %p1466_p0 }
  0x13   :  { %1346 = vmatmul.mubr.msk.f32.vlgmr.msra.gmra.mrb[6].mxu0 %vm20_vm1, %v15_v7 }
  0x14   :  { %1437 = vmatpush3.bf16.msra.mxu0 %v1436_v20  ;;  %1359 = vmatprep.mubr.msk.f32.mxu0 %vm1490_vm0, %v1491_v4 }
  0x15   :  { %1441 = vmatprep.subr.bf16.mxu0 %v1489_v2 }
  0x17   :  { %1360 = vmatmul.mubr.msk.f32.vlgmr.msra.gmra.mrb[8].mxu0 %vm20_vm1, %v15_v7 }
  0x18   :  { %1443 = vmatpush3.bf16.msra.mxu0 %v1442_v23  ;;  %1373 = vmatprep.mubr.msk.f32.mxu0 %vm1490_vm0, %v1491_v4 }
  0x19   :  { %1447 = vmatprep.subr.bf16.mxu0 %v1489_v2 }
  0x1b   :  { %1374 = vmatmul.mubr.msk.f32.vlgmr.msra.gmra.mrb[10].mxu0 %vm20_vm1, %v15_v7 }
  0x1c   :  { %1449 = vmatpush3.bf16.msra.mxu0 %v1448_v26  ;;  %1387 = vmatprep.mubr.msk.f32.mxu0 %vm1490_vm0, %v1491_v4 }
  0x1d   :  { %1453 = vmatprep.subr.bf16.mxu0 %v1489_v2 }
  0x1f   :  { %1388 = vmatmul.mubr.msk.f32.vlgmr.msra.gmra.mrb[12].mxu0 %vm20_vm1, %v15_v7 }
  0x20   :  { %1455 = vmatpush3.bf16.msra.mxu0 %v1454_v29  ;;  %1401 = vmatprep.mubr.msk.f32.mxu0 %vm1490_vm0, %v1491_v4 }
  0x23   :  { %1402 = vmatmul.mubr.msk.f32.vlgmr.msra.gmra.mrb[14].mxu0 %vm20_vm1, %v15_v7 }
  0xda   :  { %v90_v30 = vpop.f32.mrb[0].mxu0 }
  0xdb   :  { %v1305_v31 = vpop.f32.mrb[1].mxu0  ;;  %1311 = vmatmul.mubr.msk.f32.vlgmr.msra.gmra.mrb[0].mxu1 %vm20_vm1, %v90_v30 }
  0xdc   :  { %1422 = vmatpush3.bf16.msra.mxu1 %v1552_v14  ;;  %1324 = vmatprep.mubr.msk.f32.mxu1 %vm1490_vm0, %v1491_v4 }
  0xdd   :  { %1426 = vmatprep.subr.bf16.mxu1 %v1489_v2 }
  0xde   :  { %v238_v32 = vpop.f32.mrb[2].mxu0 }
  0xdf   :  { %v1319_v33 = vpop.f32.mrb[3].mxu0  ;;  %1325 = vmatmul.mubr.msk.f32.vlgmr.msra.gmra.mrb[2].mxu1 %vm20_vm1, %v238_v32 }
  0xe0   :  { %1428 = vmatpush3.bf16.msra.mxu1 %v1552_v14  ;;  %1338 = vmatprep.mubr.msk.f32.mxu1 %vm1490_vm0, %v1491_v4 }
  0xe1   :  { %1432 = vmatprep.subr.bf16.mxu1 %v1489_v2 }
  0xe2   :  { %v386_v34 = vpop.f32.mrb[4].mxu0 }
  0xe3   :  { %v1333_v35 = vpop.f32.mrb[5].mxu0  ;;  %1339 = vmatmul.mubr.msk.f32.vlgmr.msra.gmra.mrb[4].mxu1 %vm20_vm1, %v386_v34 }
  0xe4   :  { %1434 = vmatpush3.bf16.msra.mxu1 %v1552_v14  ;;  %1352 = vmatprep.mubr.msk.f32.mxu1 %vm1490_vm0, %v1491_v4 }
  0xe5   :  { %1438 = vmatprep.subr.bf16.mxu1 %v1489_v2 }
  0xe6   :  { %v534_v36 = vpop.f32.mrb[6].mxu0 }
  0xe7   :  { %v1347_v37 = vpop.f32.mrb[7].mxu0  ;;  %1353 = vmatmul.mubr.msk.f32.vlgmr.msra.gmra.mrb[6].mxu1 %vm20_vm1, %v534_v36 }
  0xe8   :  { %1440 = vmatpush3.bf16.msra.mxu1 %v1552_v14  ;;  %1366 = vmatprep.mubr.msk.f32.mxu1 %vm1490_vm0, %v1491_v4 }
  0xe9   :  { %1444 = vmatprep.subr.bf16.mxu1 %v1489_v2 }
  0xea   :  { %v682_v38 = vpop.f32.mrb[8].mxu0 }
  0xeb   :  { %v1361_v39 = vpop.f32.mrb[9].mxu0  ;;  %1367 = vmatmul.mubr.msk.f32.vlgmr.msra.gmra.mrb[8].mxu1 %vm20_vm1, %v682_v38 }
  0xec   :  { %1446 = vmatpush3.bf16.msra.mxu1 %v1552_v14  ;;  %1380 = vmatprep.mubr.msk.f32.mxu1 %vm1490_vm0, %v1491_v4 }
  0xed   :  { %1450 = vmatprep.subr.bf16.mxu1 %v1489_v2 }
  0xee   :  { %v830_v40 = vpop.f32.mrb[10].mxu0 }
  0xef   :  { %v1375_v41 = vpop.f32.mrb[11].mxu0  ;;  %1381 = vmatmul.mubr.msk.f32.vlgmr.msra.gmra.mrb[10].mxu1 %vm20_vm1, %v830_v40 }
  0xf0   :  { %1452 = vmatpush3.bf16.msra.mxu1 %v1552_v14  ;;  %1394 = vmatprep.mubr.msk.f32.mxu1 %vm1490_vm0, %v1491_v4 }
  0xf1   :  { %1456 = vmatprep.subr.bf16.mxu1 %v1489_v2 }
  0xf2   :  { %v978_v42 = vpop.f32.mrb[12].mxu0 }
  0xf3   :  { %v1389_v43 = vpop.f32.mrb[13].mxu0  ;;  %1395 = vmatmul.mubr.msk.f32.vlgmr.msra.gmra.mrb[12].mxu1 %vm20_vm1, %v978_v42 }
  0xf4   :  { %1458 = vmatpush3.bf16.msra.mxu1 %v1552_v14  ;;  %1408 = vmatprep.mubr.msk.f32.mxu1 %vm1490_vm0, %v1491_v4 }
  0xf6   :  { %v1126_v44 = vpop.f32.mrb[14].mxu0 }
  0xf7   :  { %v1403_v45 = vpop.f32.mrb[15].mxu0  ;;  %1409 = vmatmul.mubr.msk.f32.vlgmr.msra.gmra.mrb[14].mxu1 %vm20_vm1, %v1126_v44 }
 0x1ae   :  { %v163_v46 = vpop.f32.mrb[0].mxu1 }
 0x1af   :  { %168 = vst.msk [vmem:[#allocation2] sm:$0xff] %vm167_vm2, %v163_v46  ;;  %v1312_v47 = vpop.f32.mrb[1].mxu1 }
 0x1b2   :  { %v311_v48 = vpop.f32.mrb[2].mxu1 }
 0x1b3   :  { %316 = vst.msk [vmem:[#allocation2 + $0x8] sm:$0xff] %vm167_vm2, %v311_v48  ;;  %v1326_v49 = vpop.f32.mrb[3].mxu1 }
 0x1b6   :  { %v459_v50 = vpop.f32.mrb[4].mxu1 }
 0x1b7   :  { %464 = vst.msk [vmem:[#allocation2 + $0x10] sm:$0xff] %vm167_vm2, %v459_v50  ;;  %v1340_v51 = vpop.f32.mrb[5].mxu1 }
 0x1ba   :  { %v607_v52 = vpop.f32.mrb[6].mxu1 }
 0x1bb   :  { %612 = vst.msk [vmem:[#allocation2 + $0x18] sm:$0xff] %vm167_vm2, %v607_v52  ;;  %v1354_v53 = vpop.f32.mrb[7].mxu1 }
 0x1be   :  { %v755_v54 = vpop.f32.mrb[8].mxu1 }
 0x1bf   :  { %760 = vst.msk [vmem:[#allocation2 + $0x20] sm:$0xff] %vm167_vm2, %v755_v54  ;;  %v1368_v55 = vpop.f32.mrb[9].mxu1 }
 0x1c2   :  { %v903_v56 = vpop.f32.mrb[10].mxu1 }
 0x1c3   :  { %908 = vst.msk [vmem:[#allocation2 + $0x28] sm:$0xff] %vm167_vm2, %v903_v56  ;;  %v1382_v57 = vpop.f32.mrb[11].mxu1 }
 0x1c6   :  { %v1051_v58 = vpop.f32.mrb[12].mxu1 }
 0x1c7   :  { %1056 = vst.msk [vmem:[#allocation2 + $0x30] sm:$0xff] %vm167_vm2, %v1051_v58  ;;  %v1396_v59 = vpop.f32.mrb[13].mxu1 }
 0x1ca   :  { %v1199_v60 = vpop.f32.mrb[14].mxu1 }
 0x1cb   :  { %1204 = vst.msk [vmem:[#allocation2 + $0x38] sm:$0xff] %vm167_vm2, %v1199_v60  ;;  %v1410_v61 = vpop.f32.mrb[15].mxu1 }
 0x1cc   :  { %1476 = shalt.err (!%p1473_p4)
}
 0x1cd   :  { %s1477_s25 = scalar_lea.hbm %s1669_s3, 1024 }
 0x1ce   :  { %p1478_p5 = scmp.ne.s32.totalorder %s1669_s3, %s1477_s25  ;;  %p1481_p6 = scmp.lt.u32.totalorder %s1477_s25, %s1669_s3 }
 0x1d0   :  { %p1483_p7 = pnand %p1481_p6, %p1478_p5 }
 0x1d2   :  { %1486 = shalt.err (!%p1483_p7)
}
 0x1d3   :  { %s1493_s29 = smov 128   ;;  %s1494_s30 = smov 8  }
 0x1d4   :  { %1216 = dma.vmem_to_hbm [thread:$0]  %s1211_s21, 1024, %s1669_s3, [#allocation3], %s1493_s29, %s1493_s29, %s1494_s30  }
 0x1d5   :  { %1487 = dma.done.wait [#allocation3], 1024  }
 0x1d6   :  { %1488 = vsyncadd [#allocation3], 4294966272 }
 0x1d7   :  { %1220 = vsyncpa [#allocation3], 1 }

</bundles_post_ra>
